<compile_context>
chip_gen: v7x
topology: tpu7x:2x2x1
jax: 0.10.0
libtpu: 0.0.40
codegen_flags: <defaults>
</compile_context>

<pallas_src>
import functools

import jax
import jax.numpy as jnp
from jax import lax
from jax.experimental import pallas as pl
from jax.experimental.pallas import tpu as pltpu

LANES = 128
BOXES_PER_ROW = LANES // 4       # 32 boxes per 128-lane row
CHUNK_ROWS = 32                  # rows (4 vregs of f32) per inner-loop step
DEFAULT_TILE_ROWS = 4096         # 2 MiB per input per grid step
ROLL_P2 = LANES - 2              # jnp.roll semantics: out[i] = in[(i + 2) % 128]
ROLL_P1 = LANES - 1              # out[i] = in[(i + 1) % 128]


def _round_up(x, m):
    return ((x + m - 1) // m) * m


def _num_tensorcore_splits():
    """2 on dual-TensorCore chips (v7x), else 1 (v5e / v6e / unknown)."""
    try:
        kind = str(jax.devices()[0].device_kind).lower()
    except Exception:
        return 1
    return 2 if ("v7" in kind or "7x" in kind) else 1


def _box_math(p, t, loss_type):
    """IoU / GIoU math on interleaved-lane (R, 128) blocks.

    p / t rows hold 32 boxes each, laid out [x1 y1 x2 y2] * 32 along lanes.
    Results are valid on lanes with lane % 4 == 0 (one lane per box); the
    remaining lanes carry don't-care values that never leave their lane.
    """
    # Bring x2 / y2 onto the x1 / y1 lanes.
    p2 = pltpu.roll(p, ROLL_P2, 1)
    t2 = pltpu.roll(t, ROLL_P2, 1)

    dp = p2 - p                                  # lane%4==0: px2-px1, ==1: py2-py1
    dt = t2 - t
    inter_wh = jnp.maximum(jnp.minimum(p2, t2) - jnp.maximum(p, t), 0.0)
    c_wh = jnp.maximum(p2, t2) - jnp.minimum(p, t)

    # width (lane%4==0) * height (lane%4==1): bring the height onto the width lane.
    pred_area = dp * pltpu.roll(dp, ROLL_P1, 1)
    target_area = dt * pltpu.roll(dt, ROLL_P1, 1)
    area_intersect = inter_wh * pltpu.roll(inter_wh, ROLL_P1, 1)
    area_c = c_wh * pltpu.roll(c_wh, ROLL_P1, 1) + 1e-7

    area_union = target_area + pred_area - area_intersect
    ious = (area_intersect + 1.0) / (area_union + 1.0)
    extra_term = (area_c - area_union) / area_c

    if loss_type == 'iou':
        losses = -jnp.log(ious)
    elif loss_type == 'linear_iou':
        losses = 1.0 - ious
    elif loss_type == 'giou':
        losses = 1.0 - (ious - extra_term)
    else:
        raise NotImplementedError(loss_type)
    return losses, ious, extra_term


def _iou_loss_kernel(blk_tbl_ref, pred_ref, target_ref, out_ref, *,
                     loss_type, steps, tile_rows, total_blocks, n_elems,
                     boundary_masked):
    del blk_tbl_ref                     # consumed by the index_maps only
    c = pl.program_id(0)
    i = pl.program_id(1)
    block_id = c * steps + i            # true (unclamped) block id
    last_block = total_blocks - 1
    num_chunks = tile_rows // CHUNK_ROWS

    @pl.when(i == 0)
    def _init():
        out_ref[...] = jnp.zeros_like(out_ref)

    def accumulate(masked):
        # Valid flat elements (= 4 * valid boxes) remaining at block start.
        rem = n_elems - block_id * (tile_rows * LANES)

        def chunk(ci, carry):
            l_acc, i_acc, e_acc = carry
            r0 = pl.multiple_of(ci * CHUNK_ROWS, CHUNK_ROWS)
            p = pred_ref[pl.ds(r0, CHUNK_ROWS), :]
            t = target_ref[pl.ds(r0, CHUNK_ROWS), :]
            losses, ious, extra = _box_math(p, t, loss_type)
            if masked:
                row_ids = lax.broadcasted_iota(jnp.int32, (CHUNK_ROWS, LANES), 0)
                lane_ids = lax.broadcasted_iota(jnp.int32, (CHUNK_ROWS, LANES), 1)
                flat = (r0 + row_ids) * LANES + lane_ids
                keep = flat < rem
                zero = jnp.zeros_like(losses)
                losses = jnp.where(keep, losses, zero)
                ious = jnp.where(keep, ious, zero)
                extra = jnp.where(keep, extra, zero)
            return (l_acc + losses, i_acc + ious, e_acc + extra)

        zeros = jnp.zeros((CHUNK_ROWS, LANES), jnp.float32)
        l_s, i_s, e_s = lax.fori_loop(0, num_chunks, chunk,
                                      (zeros, zeros, zeros),
                                      unroll=min(8, num_chunks))
        out_ref[0, 0, :, :] += l_s
        out_ref[0, 1, :, :] += i_s
        out_ref[0, 2, :, :] += e_s

    if boundary_masked:
        # Only the boundary block pays for the mask; interior blocks don't.
        @pl.when(block_id < last_block)
        def _interior():
            accumulate(masked=False)

        @pl.when(block_id == last_block)
        def _boundary():
            accumulate(masked=True)
    else:
        @pl.when(block_id <= last_block)
        def _all():
            accumulate(masked=False)


@functools.partial(jax.jit, static_argnames=("loss_type", "max_tile_rows"))
def iou_loss_mean(pred, target, loss_type='iou', max_tile_rows=DEFAULT_TILE_ROWS):
    """pred, target: (N, 4) float32 boxes in (x1, y1, x2, y2) form.

    Returns (losses.mean(), ious.mean(), extra_term.mean()) matching
    IOULoss_mean.forward with weight=None.
    """
    # TODO(synk): the `weight is not None` branch ((losses * weight).sum()) of
    # the PyTorch module is not implemented; only the weight=None mean path is.
    assert pred.shape == target.shape and pred.shape[-1] == 4
    n = int(pred.shape[0])
    assert n != 0
    assert 4 * n < 2 ** 31   # int32 flat-index math inside the kernel

    pred = jnp.asarray(pred, jnp.float32)
    target = jnp.asarray(target, jnp.float32)

    n32 = _round_up(n, BOXES_PER_ROW)
    rows = n32 // BOXES_PER_ROW
    pad_elems = (n32 - n) * 4

    tile_rows = min(_round_up(rows, CHUNK_ROWS),
                    max(_round_up(max_tile_rows, CHUNK_ROWS), CHUNK_ROWS))
    total_blocks = -(-rows // tile_rows)
    num_splits = min(_num_tensorcore_splits(), total_blocks)
    steps = -(-total_blocks // num_splits)
    boundary_masked = total_blocks * tile_rows * BOXES_PER_ROW > n

    # Block-ownership table (scalar-prefetched into SMEM, read by index_maps).
    # If the megacore split overshoots, extra grid points are clamped to the
    # last block and skipped inside the kernel.
    blk_tbl = jnp.minimum(jnp.arange(num_splits * steps, dtype=jnp.int32),
                          total_blocks - 1)

    def to_rows(x):
        flat = x.reshape(-1)                       # contiguous, free
        if pad_elems:
            # TODO(synk): producers that keep N a multiple of 32 make this a
            # pure zero-copy bitcast (no extra HBM pass at all).
            flat = jnp.pad(flat, (0, pad_elems))
        return flat.reshape(rows, LANES)           # contiguous, free

    kernel = functools.partial(
        _iou_loss_kernel, loss_type=loss_type, steps=steps,
        tile_rows=tile_rows, total_blocks=total_blocks, n_elems=4 * n,
        boundary_masked=boundary_masked)

    grid_spec = pltpu.PrefetchScalarGridSpec(
        num_scalar_prefetch=1,
        grid=(num_splits, steps),
        in_specs=[
            pl.BlockSpec((tile_rows, LANES),
                         lambda c, i, blk: (blk[c * steps + i], 0)),
            pl.BlockSpec((tile_rows, LANES),
                         lambda c, i, blk: (blk[c * steps + i], 0)),
        ],
        out_specs=pl.BlockSpec((1, 3, CHUNK_ROWS, LANES),
                               lambda c, i, blk: (c, 0, 0, 0)),
    )

    out = pl.pallas_call(
        kernel,
        out_shape=jax.ShapeDtypeStruct((num_splits, 3, CHUNK_ROWS, LANES),
                                       jnp.float32),
        grid_spec=grid_spec,
        compiler_params=pltpu.CompilerParams(
            dimension_semantics=("parallel", "arbitrary"),
            vmem_limit_bytes=32 * 1024 * 1024),
    )(blk_tbl, to_rows(pred), to_rows(target))

    # Per-box partial sums live on lanes l % 4 == 0 only.  Tiny final reduce
    # and divide by the true N happen here.
    sums = jnp.sum(out[..., ::4], axis=(0, 2, 3))          # (3,)
    inv_n = jnp.float32(1.0 / n)
    return sums[0] * inv_n, sums[1] * inv_n, sums[2] * inv_n


def _reference(pred, target, loss_type='iou'):
    """Pure-JAX reference mirroring the PyTorch forward (weight=None)."""
    px1, py1, px2, py2 = pred[:, 0], pred[:, 1], pred[:, 2], pred[:, 3]
    tx1, ty1, tx2, ty2 = target[:, 0], target[:, 1], target[:, 2], target[:, 3]
    target_area = (tx2 - tx1) * (ty2 - ty1)
    pred_area = (px2 - px1) * (py2 - py1)
    w_inter = jnp.clip(jnp.minimum(px2, tx2) - jnp.maximum(px1, tx1), 0)
    h_inter = jnp.clip(jnp.minimum(py2, ty2) - jnp.maximum(py1, ty1), 0)
    area_intersect = w_inter * h_inter
    area_union = target_area + pred_area - area_intersect
    ious = (area_intersect + 1.0) / (area_union + 1.0)
    w_c = jnp.maximum(px2, tx2) - jnp.minimum(px1, tx1)
    h_c = jnp.maximum(py2, ty2) - jnp.minimum(py1, ty1)
    ac_union = w_c * h_c + 1e-7
    extra_term = (ac_union - area_union) / ac_union
    if loss_type == 'iou':
        losses = -jnp.log(ious)
    elif loss_type == 'linear_iou':
        losses = 1.0 - ious
    elif loss_type == 'giou':
        losses = 1.0 - (ious - extra_term)
    else:
        raise NotImplementedError(loss_type)
    return losses.mean(), ious.mean(), extra_term.mean()


def _make_boxes(key, n):
    k1, k2 = jax.random.split(key)
    xy1 = jax.random.uniform(k1, (n, 2), jnp.float32, 0.0, 0.5)
    wh = jax.random.uniform(k2, (n, 2), jnp.float32, 0.1, 0.5)
    return jnp.concatenate([xy1, xy1 + wh], axis=1)    # valid x1<x2, y1<y2


if __name__ == "__main__":
    key = jax.random.PRNGKey(0)

    # (N, loss_type, max_tile_rows).  Small tiles on the later configs force
    # multi-block accumulation, the unmasked interior path, the masked
    # boundary path, multi-chunk inner loops and the zero-pad-free path
    # (N % 32 == 0) to all be exercised.
    configs = [
        (8, 'iou', DEFAULT_TILE_ROWS),
        (300, 'linear_iou', DEFAULT_TILE_ROWS),
        (2500, 'giou', 32),
        (4096, 'iou', 64),
    ]

    for n, loss_type, tile in configs:
        key, ka, kb = jax.random.split(key, 3)
        pred = _make_boxes(ka, n)
        target = _make_boxes(kb, n)

        got = iou_loss_mean(pred, target, loss_type=loss_type,
                            max_tile_rows=tile)
        got = jax.block_until_ready(got)
        want = _reference(pred, target, loss_type=loss_type)
        for g, w in zip(got, want):
            assert jnp.allclose(g, w, atol=1e-5, rtol=1e-4), \
                (loss_type, n, float(g), float(w))

    print("KERNEL_OK")
</pallas_src>

<mosaic_0001>
module attributes {stable_mosaic.version = 11 : i64} {
  func.func @_iou_loss_kernel(%arg0: i32, %arg1: i32, %arg2: memref<1xi32, #tpu.memory_space<smem>>, %arg3: memref<32x128xf32, #tpu.memory_space<vmem>>, %arg4: memref<32x128xf32, #tpu.memory_space<vmem>>, %arg5: memref<1x3x32x128xf32, #tpu.memory_space<vmem>>) attributes {dimension_semantics = [#tpu.dimension_semantics<parallel>, #tpu.dimension_semantics<arbitrary>], iteration_bounds = array<i64: 1, 1>, scalar_prefetch = 1 : i64, scratch_operands = 0 : i64, tpu.core_type = #tpu.core_type<tc>, window_params = [{transform_indices = @transform_0, window_bounds = array<i64: 32, 128>}, {transform_indices = @transform_1, window_bounds = array<i64: 32, 128>}, {transform_indices = @transform_2, window_bounds = array<i64: 1, 3, 32, 128>}]} {
    %c1_i32 = arith.constant 1 : i32
    %0 = arith.muli %arg0, %c1_i32 : i32
    %1 = arith.addi %0, %arg1 : i32
    %c0_i32 = arith.constant 0 : i32
    %2 = arith.cmpi eq, %arg1, %c0_i32 : i32
    %3 = arith.extui %2 : i1 to i32
    %c0_i32_0 = arith.constant 0 : i32
    %4 = arith.cmpi ne, %3, %c0_i32_0 : i32
    scf.if %4 {
      %cst = arith.constant 0.000000e+00 : f32
      %11 = vector.broadcast %cst : f32 to vector<1x3x32x128xf32>
      %c0 = arith.constant 0 : index
      %c0_5 = arith.constant 0 : index
      %c0_6 = arith.constant 0 : index
      %c0_7 = arith.constant 0 : index
      %12 = vector.load %arg5[%c0, %c0_5, %c0_6, %c0_7] : memref<1x3x32x128xf32, #tpu.memory_space<vmem>>, vector<1x3x32x128xf32>
      tpu.vector_store %arg5[%c0, %c0_5, %c0_6, %c0_7], %11 {strides = array<i32>} : memref<1x3x32x128xf32, #tpu.memory_space<vmem>>, vector<1x3x32x128xf32>,
    } else {
    }
    %c0_i32_1 = arith.constant 0 : i32
    %5 = arith.cmpi slt, %1, %c0_i32_1 : i32
    %6 = arith.extui %5 : i1 to i32
    %c0_i32_2 = arith.constant 0 : i32
    %7 = arith.cmpi ne, %6, %c0_i32_2 : i32
    scf.if %7 {
      %cst = arith.constant 0.000000e+00 : f32
      %11 = vector.broadcast %cst : f32 to vector<32x128xf32>
      %c0_i32_5 = arith.constant 0 : i32
      %c32_i32 = arith.constant 32 : i32
      %12 = arith.muli %c0_i32_5, %c32_i32 : i32
      %13 = tpu.assume_multiple %12, 32 : i32
      %14 = arith.index_cast %13 : i32 to index
      %c0 = arith.constant 0 : index
      %15 = vector.load %arg3[%14, %c0] : memref<32x128xf32, #tpu.memory_space<vmem>>, vector<32x128xf32>
      %16 = arith.index_cast %13 : i32 to index
      %c0_6 = arith.constant 0 : index
      %17 = vector.load %arg4[%16, %c0_6] : memref<32x128xf32, #tpu.memory_space<vmem>>, vector<32x128xf32>
      %c126_i32 = arith.constant 126 : i32
      %18 = tpu.dynamic_rotate %15 by %c126_i32 dim 1 : vector<32x128xf32>, i32 -> vector<32x128xf32>
      %c126_i32_7 = arith.constant 126 : i32
      %19 = tpu.dynamic_rotate %17 by %c126_i32_7 dim 1 : vector<32x128xf32>, i32 -> vector<32x128xf32>
      %20 = arith.subf %18, %15 : vector<32x128xf32>
      %21 = arith.subf %19, %17 : vector<32x128xf32>
      %22 = arith.minimumf %18, %19 : vector<32x128xf32>
      %23 = arith.maximumf %15, %17 : vector<32x128xf32>
      %24 = arith.subf %22, %23 : vector<32x128xf32>
      %cst_8 = arith.constant 0.000000e+00 : f32
      %25 = vector.broadcast %cst_8 : f32 to vector<32x128xf32>
      %26 = arith.maximumf %24, %25 : vector<32x128xf32>
      %27 = arith.maximumf %18, %19 : vector<32x128xf32>
      %28 = arith.minimumf %15, %17 : vector<32x128xf32>
      %29 = arith.subf %27, %28 : vector<32x128xf32>
      %c127_i32 = arith.constant 127 : i32
      %30 = tpu.dynamic_rotate %20 by %c127_i32 dim 1 : vector<32x128xf32>, i32 -> vector<32x128xf32>
      %31 = arith.mulf %20, %30 : vector<32x128xf32>
      %c127_i32_9 = arith.constant 127 : i32
      %32 = tpu.dynamic_rotate %21 by %c127_i32_9 dim 1 : vector<32x128xf32>, i32 -> vector<32x128xf32>
      %33 = arith.mulf %21, %32 : vector<32x128xf32>
      %c127_i32_10 = arith.constant 127 : i32
      %34 = tpu.dynamic_rotate %26 by %c127_i32_10 dim 1 : vector<32x128xf32>, i32 -> vector<32x128xf32>
      %35 = arith.mulf %26, %34 : vector<32x128xf32>
      %c127_i32_11 = arith.constant 127 : i32
      %36 = tpu.dynamic_rotate %29 by %c127_i32_11 dim 1 : vector<32x128xf32>, i32 -> vector<32x128xf32>
      %37 = arith.mulf %29, %36 : vector<32x128xf32>
      %cst_12 = arith.constant 1.000000e-07 : f32
      %38 = vector.broadcast %cst_12 : f32 to vector<32x128xf32>
      %39 = arith.addf %37, %38 : vector<32x128xf32>
      %40 = arith.addf %33, %31 : vector<32x128xf32>
      %41 = arith.subf %40, %35 : vector<32x128xf32>
      %cst_13 = arith.constant 1.000000e+00 : f32
      %42 = vector.broadcast %cst_13 : f32 to vector<32x128xf32>
      %43 = arith.addf %35, %42 : vector<32x128xf32>
      %cst_14 = arith.constant 1.000000e+00 : f32
      %44 = vector.broadcast %cst_14 : f32 to vector<32x128xf32>
      %45 = arith.addf %41, %44 : vector<32x128xf32>
      %46 = arith.divf %43, %45 : vector<32x128xf32>
      %47 = arith.subf %39, %41 : vector<32x128xf32>
      %48 = arith.divf %47, %39 : vector<32x128xf32>
      %49 = math.log %46 : vector<32x128xf32>
      %cst_15 = arith.constant 0.000000e+00 : f32
      %50 = vector.broadcast %cst_15 : f32 to vector<32x128xf32>
      %51 = arith.subf %50, %49 : vector<32x128xf32>
      %52 = arith.addf %11, %51 : vector<32x128xf32>
      %53 = arith.addf %11, %46 : vector<32x128xf32>
      %54 = arith.addf %11, %48 : vector<32x128xf32>
      %c1_i32_16 = arith.constant 1 : i32
      %c0_17 = arith.constant 0 : index
      %c0_18 = arith.constant 0 : index
      %c0_19 = arith.constant 0 : index
      %c0_20 = arith.constant 0 : index
      %55 = vector.load %arg5[%c0_17, %c0_18, %c0_19, %c0_20] : memref<1x3x32x128xf32, #tpu.memory_space<vmem>>, vector<1x1x32x128xf32>
      %56 = vector.shape_cast %55 : vector<1x1x32x128xf32> to vector<32x128xf32>
      %57 = arith.addf %56, %52 : vector<32x128xf32>
      %c0_21 = arith.constant 0 : index
      %c0_22 = arith.constant 0 : index
      %c0_23 = arith.constant 0 : index
      %c0_24 = arith.constant 0 : index
      %58 = vector.load %arg5[%c0_21, %c0_22, %c0_23, %c0_24] : memref<1x3x32x128xf32, #tpu.memory_space<vmem>>, vector<1x1x32x128xf32>
      %59 = vector.shape_cast %58 : vector<1x1x32x128xf32> to vector<32x128xf32>
      %60 = vector.shape_cast %57 : vector<32x128xf32> to vector<1x1x32x128xf32>
      tpu.vector_store %arg5[%c0_21, %c0_22, %c0_23, %c0_24], %60 {strides = array<i32>} : memref<1x3x32x128xf32, #tpu.memory_space<vmem>>, vector<1x1x32x128xf32>,
      %c0_25 = arith.constant 0 : index
      %c1 = arith.constant 1 : index
      %c0_26 = arith.constant 0 : index
      %c0_27 = arith.constant 0 : index
      %61 = vector.load %arg5[%c0_25, %c1, %c0_26, %c0_27] : memref<1x3x32x128xf32, #tpu.memory_space<vmem>>, vector<1x1x32x128xf32>
      %62 = vector.shape_cast %61 : vector<1x1x32x128xf32> to vector<32x128xf32>
      %63 = arith.addf %62, %53 : vector<32x128xf32>
      %c0_28 = arith.constant 0 : index
      %c1_29 = arith.constant 1 : index
      %c0_30 = arith.constant 0 : index
      %c0_31 = arith.constant 0 : index
      %64 = vector.load %arg5[%c0_28, %c1_29, %c0_30, %c0_31] : memref<1x3x32x128xf32, #tpu.memory_space<vmem>>, vector<1x1x32x128xf32>
      %65 = vector.shape_cast %64 : vector<1x1x32x128xf32> to vector<32x128xf32>
      %66 = vector.shape_cast %63 : vector<32x128xf32> to vector<1x1x32x128xf32>
      tpu.vector_store %arg5[%c0_28, %c1_29, %c0_30, %c0_31], %66 {strides = array<i32>} : memref<1x3x32x128xf32, #tpu.memory_space<vmem>>, vector<1x1x32x128xf32>,
      %c0_32 = arith.constant 0 : index
      %c2 = arith.constant 2 : index
      %c0_33 = arith.constant 0 : index
      %c0_34 = arith.constant 0 : index
      %67 = vector.load %arg5[%c0_32, %c2, %c0_33, %c0_34] : memref<1x3x32x128xf32, #tpu.memory_space<vmem>>, vector<1x1x32x128xf32>
      %68 = vector.shape_cast %67 : vector<1x1x32x128xf32> to vector<32x128xf32>
      %69 = arith.addf %68, %54 : vector<32x128xf32>
      %c0_35 = arith.constant 0 : index
      %c2_36 = arith.constant 2 : index
      %c0_37 = arith.constant 0 : index
      %c0_38 = arith.constant 0 : index
      %70 = vector.load %arg5[%c0_35, %c2_36, %c0_37, %c0_38] : memref<1x3x32x128xf32, #tpu.memory_space<vmem>>, vector<1x1x32x128xf32>
      %71 = vector.shape_cast %70 : vector<1x1x32x128xf32> to vector<32x128xf32>
      %72 = vector.shape_cast %69 : vector<32x128xf32> to vector<1x1x32x128xf32>
      tpu.vector_store %arg5[%c0_35, %c2_36, %c0_37, %c0_38], %72 {strides = array<i32>} : memref<1x3x32x128xf32, #tpu.memory_space<vmem>>, vector<1x1x32x128xf32>,
    } else {
    }
    %c0_i32_3 = arith.constant 0 : i32
    %8 = arith.cmpi eq, %1, %c0_i32_3 : i32
    %9 = arith.extui %8 : i1 to i32
    %c0_i32_4 = arith.constant 0 : i32
    %10 = arith.cmpi ne, %9, %c0_i32_4 : i32
    scf.if %10 {
      %c4096_i32 = arith.constant 4096 : i32
      %11 = arith.muli %1, %c4096_i32 : i32
      %c32_i32 = arith.constant 32 : i32
      %12 = arith.subi %c32_i32, %11 : i32
      %cst = arith.constant 0.000000e+00 : f32
      %13 = vector.broadcast %cst : f32 to vector<32x128xf32>
      %c0_i32_5 = arith.constant 0 : i32
      %c32_i32_6 = arith.constant 32 : i32
      %14 = arith.muli %c0_i32_5, %c32_i32_6 : i32
      %15 = tpu.assume_multiple %14, 32 : i32
      %16 = arith.index_cast %15 : i32 to index
      %c0 = arith.constant 0 : index
      %17 = vector.load %arg3[%16, %c0] : memref<32x128xf32, #tpu.memory_space<vmem>>, vector<32x128xf32>
      %18 = arith.index_cast %15 : i32 to index
      %c0_7 = arith.constant 0 : index
      %19 = vector.load %arg4[%18, %c0_7] : memref<32x128xf32, #tpu.memory_space<vmem>>, vector<32x128xf32>
      %c126_i32 = arith.constant 126 : i32
      %20 = tpu.dynamic_rotate %17 by %c126_i32 dim 1 : vector<32x128xf32>, i32 -> vector<32x128xf32>
      %c126_i32_8 = arith.constant 126 : i32
      %21 = tpu.dynamic_rotate %19 by %c126_i32_8 dim 1 : vector<32x128xf32>, i32 -> vector<32x128xf32>
      %22 = arith.subf %20, %17 : vector<32x128xf32>
      %23 = arith.subf %21, %19 : vector<32x128xf32>
      %24 = arith.minimumf %20, %21 : vector<32x128xf32>
      %25 = arith.maximumf %17, %19 : vector<32x128xf32>
      %26 = arith.subf %24, %25 : vector<32x128xf32>
      %cst_9 = arith.constant 0.000000e+00 : f32
      %27 = vector.broadcast %cst_9 : f32 to vector<32x128xf32>
      %28 = arith.maximumf %26, %27 : vector<32x128xf32>
      %29 = arith.maximumf %20, %21 : vector<32x128xf32>
      %30 = arith.minimumf %17, %19 : vector<32x128xf32>
      %31 = arith.subf %29, %30 : vector<32x128xf32>
      %c127_i32 = arith.constant 127 : i32
      %32 = tpu.dynamic_rotate %22 by %c127_i32 dim 1 : vector<32x128xf32>, i32 -> vector<32x128xf32>
      %33 = arith.mulf %22, %32 : vector<32x128xf32>
      %c127_i32_10 = arith.constant 127 : i32
      %34 = tpu.dynamic_rotate %23 by %c127_i32_10 dim 1 : vector<32x128xf32>, i32 -> vector<32x128xf32>
      %35 = arith.mulf %23, %34 : vector<32x128xf32>
      %c127_i32_11 = arith.constant 127 : i32
      %36 = tpu.dynamic_rotate %28 by %c127_i32_11 dim 1 : vector<32x128xf32>, i32 -> vector<32x128xf32>
      %37 = arith.mulf %28, %36 : vector<32x128xf32>
      %c127_i32_12 = arith.constant 127 : i32
      %38 = tpu.dynamic_rotate %31 by %c127_i32_12 dim 1 : vector<32x128xf32>, i32 -> vector<32x128xf32>
      %39 = arith.mulf %31, %38 : vector<32x128xf32>
      %cst_13 = arith.constant 1.000000e-07 : f32
      %40 = vector.broadcast %cst_13 : f32 to vector<32x128xf32>
      %41 = arith.addf %39, %40 : vector<32x128xf32>
      %42 = arith.addf %35, %33 : vector<32x128xf32>
      %43 = arith.subf %42, %37 : vector<32x128xf32>
      %cst_14 = arith.constant 1.000000e+00 : f32
      %44 = vector.broadcast %cst_14 : f32 to vector<32x128xf32>
      %45 = arith.addf %37, %44 : vector<32x128xf32>
      %cst_15 = arith.constant 1.000000e+00 : f32
      %46 = vector.broadcast %cst_15 : f32 to vector<32x128xf32>
      %47 = arith.addf %43, %46 : vector<32x128xf32>
      %48 = arith.divf %45, %47 : vector<32x128xf32>
      %49 = arith.subf %41, %43 : vector<32x128xf32>
      %50 = arith.divf %49, %41 : vector<32x128xf32>
      %51 = math.log %48 : vector<32x128xf32>
      %cst_16 = arith.constant 0.000000e+00 : f32
      %52 = vector.broadcast %cst_16 : f32 to vector<32x128xf32>
      %53 = arith.subf %52, %51 : vector<32x128xf32>
      %54 = tpu.iota {dimensions = array<i32: 0>} : vector<32x128xi32>
      %55 = tpu.iota {dimensions = array<i32: 1>} : vector<32x128xi32>
      %56 = vector.broadcast %15 : i32 to vector<32x128xi32>
      %57 = arith.addi %56, %54 : vector<32x128xi32>
      %c128_i32 = arith.constant 128 : i32
      %58 = vector.broadcast %c128_i32 : i32 to vector<32x128xi32>
      %59 = arith.muli %57, %58 : vector<32x128xi32>
      %60 = arith.addi %59, %55 : vector<32x128xi32>
      %61 = vector.broadcast %12 : i32 to vector<32x128xi32>
      %62 = arith.cmpi slt, %60, %61 : vector<32x128xi32>
      %cst_17 = arith.constant 0.000000e+00 : f32
      %63 = vector.broadcast %cst_17 : f32 to vector<32x128xf32>
      %64 = arith.select %62, %53, %63 : vector<32x128xi1>, vector<32x128xf32>
      %65 = arith.select %62, %48, %63 : vector<32x128xi1>, vector<32x128xf32>
      %66 = arith.select %62, %50, %63 : vector<32x128xi1>, vector<32x128xf32>
      %67 = arith.addf %13, %64 : vector<32x128xf32>
      %68 = arith.addf %13, %65 : vector<32x128xf32>
      %69 = arith.addf %13, %66 : vector<32x128xf32>
      %c1_i32_18 = arith.constant 1 : i32
      %c0_19 = arith.constant 0 : index
      %c0_20 = arith.constant 0 : index
      %c0_21 = arith.constant 0 : index
      %c0_22 = arith.constant 0 : index
      %70 = vector.load %arg5[%c0_19, %c0_20, %c0_21, %c0_22] : memref<1x3x32x128xf32, #tpu.memory_space<vmem>>, vector<1x1x32x128xf32>
      %71 = vector.shape_cast %70 : vector<1x1x32x128xf32> to vector<32x128xf32>
      %72 = arith.addf %71, %67 : vector<32x128xf32>
      %c0_23 = arith.constant 0 : index
      %c0_24 = arith.constant 0 : index
      %c0_25 = arith.constant 0 : index
      %c0_26 = arith.constant 0 : index
      %73 = vector.load %arg5[%c0_23, %c0_24, %c0_25, %c0_26] : memref<1x3x32x128xf32, #tpu.memory_space<vmem>>, vector<1x1x32x128xf32>
      %74 = vector.shape_cast %73 : vector<1x1x32x128xf32> to vector<32x128xf32>
      %75 = vector.shape_cast %72 : vector<32x128xf32> to vector<1x1x32x128xf32>
      tpu.vector_store %arg5[%c0_23, %c0_24, %c0_25, %c0_26], %75 {strides = array<i32>} : memref<1x3x32x128xf32, #tpu.memory_space<vmem>>, vector<1x1x32x128xf32>,
      %c0_27 = arith.constant 0 : index
      %c1 = arith.constant 1 : index
      %c0_28 = arith.constant 0 : index
      %c0_29 = arith.constant 0 : index
      %76 = vector.load %arg5[%c0_27, %c1, %c0_28, %c0_29] : memref<1x3x32x128xf32, #tpu.memory_space<vmem>>, vector<1x1x32x128xf32>
      %77 = vector.shape_cast %76 : vector<1x1x32x128xf32> to vector<32x128xf32>
      %78 = arith.addf %77, %68 : vector<32x128xf32>
      %c0_30 = arith.constant 0 : index
      %c1_31 = arith.constant 1 : index
      %c0_32 = arith.constant 0 : index
      %c0_33 = arith.constant 0 : index
      %79 = vector.load %arg5[%c0_30, %c1_31, %c0_32, %c0_33] : memref<1x3x32x128xf32, #tpu.memory_space<vmem>>, vector<1x1x32x128xf32>
      %80 = vector.shape_cast %79 : vector<1x1x32x128xf32> to vector<32x128xf32>
      %81 = vector.shape_cast %78 : vector<32x128xf32> to vector<1x1x32x128xf32>
      tpu.vector_store %arg5[%c0_30, %c1_31, %c0_32, %c0_33], %81 {strides = array<i32>} : memref<1x3x32x128xf32, #tpu.memory_space<vmem>>, vector<1x1x32x128xf32>,
      %c0_34 = arith.constant 0 : index
      %c2 = arith.constant 2 : index
      %c0_35 = arith.constant 0 : index
      %c0_36 = arith.constant 0 : index
      %82 = vector.load %arg5[%c0_34, %c2, %c0_35, %c0_36] : memref<1x3x32x128xf32, #tpu.memory_space<vmem>>, vector<1x1x32x128xf32>
      %83 = vector.shape_cast %82 : vector<1x1x32x128xf32> to vector<32x128xf32>
      %84 = arith.addf %83, %69 : vector<32x128xf32>
      %c0_37 = arith.constant 0 : index
      %c2_38 = arith.constant 2 : index
      %c0_39 = arith.constant 0 : index
      %c0_40 = arith.constant 0 : index
      %85 = vector.load %arg5[%c0_37, %c2_38, %c0_39, %c0_40] : memref<1x3x32x128xf32, #tpu.memory_space<vmem>>, vector<1x1x32x128xf32>
      %86 = vector.shape_cast %85 : vector<1x1x32x128xf32> to vector<32x128xf32>
      %87 = vector.shape_cast %84 : vector<32x128xf32> to vector<1x1x32x128xf32>
      tpu.vector_store %arg5[%c0_37, %c2_38, %c0_39, %c0_40], %87 {strides = array<i32>} : memref<1x3x32x128xf32, #tpu.memory_space<vmem>>, vector<1x1x32x128xf32>,
    } else {
    }
    return
  }
  func.func @transform_0(%arg0: i32, %arg1: i32, %arg2: memref<1xi32, #tpu.memory_space<smem>>) -> (i32, i32) {
    %c1_i32 = arith.constant 1 : i32
    %0 = arith.muli %arg0, %c1_i32 : i32
    %1 = arith.addi %0, %arg1 : i32
    %2 = arith.index_cast %1 : i32 to index
    %3 = memref.load %arg2[%2] : memref<1xi32, #tpu.memory_space<smem>>
    %c0_i32 = arith.constant 0 : i32
    %c0_i32_0 = arith.constant 0 : i32
    return %3, %c0_i32 : i32, i32
  }
  func.func @transform_1(%arg0: i32, %arg1: i32, %arg2: memref<1xi32, #tpu.memory_space<smem>>) -> (i32, i32) {
    %c1_i32 = arith.constant 1 : i32
    %0 = arith.muli %arg0, %c1_i32 : i32
    %1 = arith.addi %0, %arg1 : i32
    %2 = arith.index_cast %1 : i32 to index
    %3 = memref.load %arg2[%2] : memref<1xi32, #tpu.memory_space<smem>>
    %c0_i32 = arith.constant 0 : i32
    %c0_i32_0 = arith.constant 0 : i32
    return %3, %c0_i32 : i32, i32
  }
  func.func @transform_2(%arg0: i32, %arg1: i32, %arg2: memref<1xi32, #tpu.memory_space<smem>>) -> (i32, i32, i32, i32) {
    %c0_i32 = arith.constant 0 : i32
    %c0_i32_0 = arith.constant 0 : i32
    %c0_i32_1 = arith.constant 0 : i32
    %c0_i32_2 = arith.constant 0 : i32
    return %arg0, %c0_i32, %c0_i32_0, %c0_i32_1 : i32, i32, i32, i32
  }
}

</mosaic_0001>

<bundles_post_ra>
// kernel: iou_loss_mean.1
= control target key start
LH: loop header
LB: loop body
LE: loop exit
PB: predicated region body
PF: predicated region fallthrough
CT: control target
= control target key end

     0   :  { %s636_s18 = smov 126   ;;  %v478_v63 = vlaneseq  ;;  %s821_s0 = inlined_call_operand.<no memory space> [shape: s32[1], index: 0, kind: input, shape index: {}]   ;;  %s822_s1 = inlined_call_operand.vmem [shape: f32[1,128], index: 1, kind: input, shape index: {}]   ;;  %s823_s2 = inlined_call_operand.vmem [shape: f32[1,128], index: 2, kind: input, shape index: {}]   ;;  %s824_s3 = inlined_call_operand.vmem [shape: f32[1,3,32,128], index: 3, kind: output, shape index: {}]  }
   0x1   :  { %s575_s14 = sshll.u32 %s821_s0, 5 }
   0x2   :  { %p60_p0 = scmp.lt.s32.totalorder %s575_s14, 0 }
   0x4   :  { %s826_s14 = smov (!%p60_p0, %s575_s14), 0 }
   0x5   :  { %s62_s17 = scalar_lea.vmem %s822_s1, %s826_s14  ;;  %s75_s20 = scalar_lea.vmem %s823_s2, %s826_s14 }
   0x6   :  { %v664_v0 = vld [vmem:[%s62_s17 + $0x10] sm:$0xff]  ;;  %v666_v1 = vld [vmem:[%s62_s17] sm:$0xff]  ;;  %v670_v2 = vld [vmem:[%s62_s17 + $0x18] sm:$0xff]  ;;  %s637_s1 = smov 127  }
   0x7   :  { %330 = vrot.lane.b32.xlu1 %v664_v0, %s636_s18  ;;  %326 = vrot.lane.b32.xlu0 %v666_v1, %s636_s18  ;;  %v672_v3 = vld [vmem:[%s62_s17 + $0x8] sm:$0xff]  ;;  %v322_v5 = vld [vmem:[%s75_s20] sm:$0xff] }
   0x8   :  { %v679_v4 = vld [vmem:[%s75_s20 + $0x8] sm:$0xff]  ;;  %v682_v6 = vld [vmem:[%s75_s20 + $0x18] sm:$0xff]  ;;  %v324_v7 = vld [vmem:[%s75_s20 + $0x10] sm:$0xff]  ;;  %v354_v19 = vmax.f32 %v666_v1, %v322_v5  ;;  %v370_v36 = vmin.f32 %v666_v1, %v322_v5 }
   0x9   :  { %v355_v23 = vmax.f32 %v672_v3, %v679_v4  ;;  %v356_v27 = vmax.f32 %v664_v0, %v324_v7  ;;  %v357_v31 = vmax.f32 %v670_v2, %v682_v6  ;;  %v371_v41 = vmin.f32 %v672_v3, %v679_v4 }
   0xa   :  { %v372_v42 = vmin.f32 %v664_v0, %v324_v7  ;;  %v373_v50 = vmin.f32 %v670_v2, %v682_v6 }
   0xb   :  { %332 = vrot.lane.b32.xlu1 %v670_v2, %s636_s18  ;;  %328 = vrot.lane.b32.xlu0 %v672_v3, %s636_s18 }
   0xf   :  { %336 = vrot.lane.b32.xlu1 %v679_v4, %s636_s18  ;;  %334 = vrot.lane.b32.xlu0 %v322_v5, %s636_s18 }
  0x13   :  { %340 = vrot.lane.b32.xlu1 %v682_v6, %s636_s18  ;;  %338 = vrot.lane.b32.xlu0 %v324_v7, %s636_s18 }
  0x79   :  { %v331_v8 = vpop.permute.xlu1 %330  ;;  %v327_v9 = vpop.permute.xlu0 %326 }
  0x7a   :  { %v686_v10 = vsub.f32 %v327_v9, %v666_v1  ;;  %v689_v11 = vsub.f32 %v331_v8, %v664_v0 }
  0x7c   :  { %378 = vrot.lane.b32.xlu0 %v686_v10, %s637_s1 }
  0x7d   :  { %v333_v12 = vpop.permute.xlu1 %332  ;;  %v329_v13 = vpop.permute.xlu0 %328 }
  0x7e   :  { %v694_v14 = vsub.f32 %v329_v13, %v672_v3  ;;  %v697_v15 = vsub.f32 %v333_v12, %v670_v2 }
  0x80   :  { %382 = vrot.lane.b32.xlu0 %v689_v11, %s637_s1  ;;  %380 = vrot.lane.b32.xlu1 %v694_v14, %s637_s1 }
  0x81   :  { %v337_v16 = vpop.permute.xlu1 %336  ;;  %v335_v17 = vpop.permute.xlu0 %334 }
  0x82   :  { %v346_v18 = vsub.f32 %v335_v17, %v322_v5  ;;  %v350_v20 = vmin.f32 %v327_v9, %v335_v17  ;;  %v347_v21 = vsub.f32 %v337_v16, %v679_v4  ;;  %v351_v24 = vmin.f32 %v329_v13, %v337_v16 }
  0x83   :  { %v366_v37 = vmax.f32 %v327_v9, %v335_v17  ;;  %v367_v43 = vmax.f32 %v329_v13, %v337_v16  ;;  %v479_v9 = vshrl.u32 %v478_v63, 7 }
  0x84   :  { %384 = vrot.lane.b32.xlu1 %v697_v15, %s637_s1  ;;  %390 = vrot.lane.b32.xlu0 %v346_v18, %s637_s1  ;;  %v358_v26 = vsub.f32 %v350_v20, %v354_v19  ;;  %v359_v34 = vsub.f32 %v351_v24, %v355_v23 }
  0x85   :  { %v339_v22 = vpop.permute.xlu0 %338  ;;  %v341_v28 = vpop.permute.xlu1 %340  ;;  %v374_v46 = vsub.f32 %v366_v37, %v370_v36  ;;  %v375_v48 = vsub.f32 %v367_v43, %v371_v41  ;;  %v480_v23 = vadd.s32 8, %v479_v9  ;;  %v482_v36 = vadd.s32 24, %v479_v9 }
  0x86   :  { %v348_v25 = vsub.f32 %v339_v22, %v324_v7  ;;  %v352_v29 = vmin.f32 %v331_v8, %v339_v22  ;;  %v349_v30 = vsub.f32 %v341_v28, %v682_v6  ;;  %v353_v32 = vmin.f32 %v333_v12, %v341_v28 }
  0x87   :  { %v362_v33 = vmax.f32 %v358_v26, 0.0  ;;  %v363_v38 = vmax.f32 %v359_v34, 0.0  ;;  %v368_v44 = vmax.f32 %v331_v8, %v339_v22  ;;  %v369_v47 = vmax.f32 %v333_v12, %v341_v28 }
  0x88   :  { %392 = vrot.lane.b32.xlu1 %v347_v21, %s637_s1  ;;  %394 = vrot.lane.b32.xlu0 %v348_v25, %s637_s1  ;;  %v360_v35 = vsub.f32 %v352_v29, %v356_v27  ;;  %v361_v40 = vsub.f32 %v353_v32, %v357_v31  ;;  %v490_v22 = vmul.u32 128, %v479_v9 }
  0x89   :  { %v376_v49 = vsub.f32 %v368_v44, %v372_v42  ;;  %v730_v51 = vsub.f32 %v369_v47, %v373_v50  ;;  %v493_v47 = vmul.u32 128, %v482_v36 }
  0x8a   :  { %v364_v39 = vmax.f32 %v360_v35, 0.0  ;;  %v365_v45 = vmax.f32 %v361_v40, 0.0 }
  0x8c   :  { %396 = vrot.lane.b32.xlu1 %v349_v30, %s637_s1  ;;  %402 = vrot.lane.b32.xlu0 %v362_v33, %s637_s1 }
  0x90   :  { %404 = vrot.lane.b32.xlu1 %v363_v38, %s637_s1  ;;  %406 = vrot.lane.b32.xlu0 %v364_v39, %s637_s1 }
  0x94   :  { %408 = vrot.lane.b32.xlu1 %v365_v45, %s637_s1  ;;  %414 = vrot.lane.b32.xlu0 %v374_v46, %s637_s1 }
  0x98   :  { %416 = vrot.lane.b32.xlu1 %v375_v48, %s637_s1  ;;  %418 = vrot.lane.b32.xlu0 %v376_v49, %s637_s1 }
  0x9c   :  { %420 = vrot.lane.b32.xlu1 %v730_v51, %s637_s1 }
  0xee   :  { %v379_v52 = vpop.permute.xlu0 %378 }
  0xef   :  { %v386_v60 = vmul.f32 %v379_v52, %v686_v10 }
  0xf2   :  { %v381_v53 = vpop.permute.xlu1 %380  ;;  %v383_v54 = vpop.permute.xlu0 %382 }
  0xf3   :  { %v387_v4 = vmul.f32 %v381_v53, %v694_v14  ;;  %v388_v5 = vmul.f32 %v383_v54, %v689_v11 }
  0xf6   :  { %v385_v55 = vpop.permute.xlu1 %384  ;;  %v391_v56 = vpop.permute.xlu0 %390 }
  0xf7   :  { %v398_v59 = vmul.f32 %v391_v56, %v346_v18  ;;  %v389_v19 = vmul.f32 %v385_v55, %v697_v15 }
  0xf9   :  { %v430_v1 = vadd.f32 %v398_v59, %v386_v60 }
  0xfa   :  { %v393_v57 = vpop.permute.xlu1 %392  ;;  %v395_v58 = vpop.permute.xlu0 %394 }
  0xfb   :  { %v399_v61 = vmul.f32 %v393_v57, %v347_v21  ;;  %v400_v2 = vmul.f32 %v395_v58, %v348_v25  ;;  %v484_v21 = vand.u32 127, %v478_v63 }
  0xfd   :  { %v431_v7 = vadd.f32 %v399_v61, %v387_v4  ;;  %v432_v16 = vadd.f32 %v400_v2, %v388_v5  ;;  %v749_v32 = vadd.s32 %v490_v22, %v484_v21  ;;  %v497_v57 = vadd.s32 %v493_v47, %v484_v21 }
  0xfe   :  { %v397_v62 = vpop.permute.xlu1 %396  ;;  %v403_v0 = vpop.permute.xlu0 %402 }
  0xff   :  { %v410_v3 = vmul.f32 %v403_v0, %v362_v33  ;;  %v401_v8 = vmul.f32 %v397_v62, %v349_v30  ;;  %v481_v30 = vadd.s32 16, %v479_v9  ;;  %v491_v33 = vmul.u32 128, %v480_v23 }
 0x100   :  { %vm499_vm0 = vcmp.lt.s32.totalorder %v749_v32, 32  ;;  %vm502_vm3 = vcmp.lt.s32.totalorder %v497_v57, 32 }
 0x101   :  { %v737_v6 = vsub.f32 %v430_v1, %v410_v3  ;;  %v433_v11 = vadd.f32 %v401_v8, %v389_v19  ;;  %v438_v42 = vadd.f32 1.0, %v410_v3  ;;  %v752_v43 = vadd.s32 %v491_v33, %v484_v21 }
 0x102   :  { %v405_v12 = vpop.permute.xlu1 %404  ;;  %v407_v13 = vpop.permute.xlu0 %406 }
 0x103   :  { %v442_v10 = vadd.f32 1.0, %v737_v6  ;;  %v411_v17 = vmul.f32 %v405_v12, %v363_v38  ;;  %v412_v18 = vmul.f32 %v407_v13, %v364_v39  ;;  %v492_v39 = vmul.u32 128, %v481_v30 }
 0x104   :  { %vm500_vm1 = vcmp.lt.s32.totalorder %v752_v43, 32 }
 0x105   :  { %612 = vrcp.f32 %v442_v10  ;;  %v741_v20 = vsub.f32 %v431_v7, %v411_v17  ;;  %v743_v14 = vsub.f32 %v432_v16, %v412_v18  ;;  %v756_v53 = vadd.s32 %v492_v39, %v484_v21 }
 0x106   :  { %v409_v24 = vpop.permute.xlu1 %408  ;;  %v415_v25 = vpop.permute.xlu0 %414  ;;  %v439_v54 = vadd.f32 1.0, %v411_v17  ;;  %v440_v56 = vadd.f32 1.0, %v412_v18 }
 0x107   :  { %v443_v26 = vadd.f32 1.0, %v741_v20  ;;  %v444_v27 = vadd.f32 1.0, %v743_v14  ;;  %v413_v28 = vmul.f32 %v409_v24, %v365_v45  ;;  %v422_v29 = vmul.f32 %v415_v25, %v374_v46 }
 0x108   :  { %vm501_vm2 = vcmp.lt.s32.totalorder %v756_v53, 32 }
 0x109   :  { %614 = vrcp.f32 %v443_v26  ;;  %v747_v15 = vsub.f32 %v433_v11, %v413_v28  ;;  %v426_v31 = vadd.f32 1e-07, %v422_v29  ;;  %v441_v63 = vadd.f32 1.0, %v413_v28 }
 0x10a   :  { %616 = vrcp.f32 %v444_v27  ;;  %v417_v34 = vpop.permute.xlu1 %416  ;;  %v419_v35 = vpop.permute.xlu0 %418 }
 0x10b   :  { %v445_v37 = vadd.f32 1.0, %v747_v15  ;;  %618 = vrcp.f32 %v426_v31  ;;  %v423_v38 = vmul.f32 %v417_v34, %v375_v48  ;;  %v424_v40 = vmul.f32 %v419_v35, %v376_v49 }
 0x10d   :  { %620 = vrcp.f32 %v445_v37  ;;  %v427_v41 = vadd.f32 1e-07, %v423_v38  ;;  %v428_v44 = vadd.f32 1e-07, %v424_v40 }
 0x10e   :  { %v421_v45 = vpop.permute.xlu1 %420 }
 0x10f   :  { %v613_v46 = vpop.eup %612  ;;  %622 = vrcp.f32 %v427_v41  ;;  %v425_v50 = vmul.f32 %v421_v45, %v730_v51  ;;  %v454_v51 = vsub.f32 %v426_v31, %v737_v6  ;;  %v455_v5 = vsub.f32 %v427_v41, %v741_v20 }
 0x110   :  { %v447_v52 = vmul.f32 %v613_v46, %v438_v42  ;;  %624 = vrcp.f32 %v428_v44  ;;  %v456_v7 = vsub.f32 %v428_v44, %v743_v14 }
 0x111   :  { %v429_v48 = vadd.f32 1e-07, %v425_v50 }
 0x112   :  { %626 = vlog2.f32 %v447_v52  ;;  %v507_v49 = vsel %vm499_vm0, %v447_v52, 0.0 }
 0x113   :  { %v615_v55 = vpop.eup %614  ;;  %628 = vrcp.f32 %v429_v48  ;;  %597 = vst [vmem:[%s824_s3 + $0x20] sm:$0xff] %v507_v49  ;;  %v457_v17 = vsub.f32 %v429_v48, %v747_v15 }
 0x114   :  { %v617_v58 = vpop.eup %616  ;;  %v449_v59 = vmul.f32 %v615_v55, %v439_v54 }
 0x115   :  { %v619_v60 = vpop.eup %618  ;;  %v451_v61 = vmul.f32 %v617_v58, %v440_v56 }
 0x116   :  { %630 = vlog2.f32 %v449_v59  ;;  %v508_v62 = vsel %vm500_vm1, %v449_v59, 0.0  ;;  %v459_v0 = vmul.f32 %v619_v60, %v454_v51 }
 0x117   :  { %v621_v1 = vpop.eup %620  ;;  %632 = vlog2.f32 %v451_v61  ;;  %v509_v2 = vsel %vm501_vm2, %v451_v61, 0.0  ;;  %598 = vst [vmem:[%s824_s3 + $0x28] sm:$0xff] %v508_v62 }
 0x118   :  { %v453_v3 = vmul.f32 %v621_v1, %v441_v63  ;;  %v511_v4 = vsel %vm499_vm0, %v459_v0, 0.0  ;;  %599 = vst [vmem:[%s824_s3 + $0x30] sm:$0xff] %v509_v2 }
 0x119   :  { %v623_v6 = vpop.eup %622  ;;  %605 = vst [vmem:[%s824_s3 + $0x40] sm:$0xff] %v511_v4 }
 0x11a   :  { %v625_v8 = vpop.eup %624  ;;  %634 = vlog2.f32 %v453_v3  ;;  %v510_v9 = vsel %vm502_vm3, %v453_v3, 0.0  ;;  %v461_v12 = vmul.f32 %v623_v6, %v455_v5 }
 0x11b   :  { %v463_v13 = vmul.f32 %v625_v8, %v456_v7  ;;  %600 = vst [vmem:[%s824_s3 + $0x38] sm:$0xff] %v510_v9 }
 0x11c   :  { %v627_v16 = vpop.eup %626  ;;  %v512_v10 = vsel %vm500_vm1, %v461_v12, 0.0 }
 0x11d   :  { %v629_v18 = vpop.eup %628  ;;  %v467_v19 = vmul.f32 0.6931472, %v627_v16  ;;  %v513_v20 = vsel %vm501_vm2, %v463_v13, 0.0  ;;  %606 = vst [vmem:[%s824_s3 + $0x48] sm:$0xff] %v512_v10 }
 0x11e   :  { %v465_v14 = vmul.f32 %v629_v18, %v457_v17  ;;  %607 = vst [vmem:[%s824_s3 + $0x50] sm:$0xff] %v513_v20 }
 0x11f   :  { %v474_v11 = vsub.f32 0.0, %v467_v19 }
 0x120   :  { %v631_v21 = vpop.eup %630  ;;  %v514_v22 = vsel %vm502_vm3, %v465_v14, 0.0 }
 0x121   :  { %v633_v23 = vpop.eup %632  ;;  %v503_v24 = vsel %vm499_vm0, %v474_v11, 0.0  ;;  %v469_v25 = vmul.f32 0.6931472, %v631_v21  ;;  %608 = vst [vmem:[%s824_s3 + $0x58] sm:$0xff] %v514_v22 }
 0x122   :  { %v471_v26 = vmul.f32 0.6931472, %v633_v23  ;;  %535 = vst [vmem:[%s824_s3] sm:$0xff] %v503_v24 }
 0x123   :  { %v475_v27 = vsub.f32 0.0, %v469_v25 }
 0x124   :  { %v635_v28 = vpop.eup %634  ;;  %v476_v29 = vsub.f32 0.0, %v471_v26 }
 0x125   :  { %v504_v30 = vsel %vm500_vm1, %v475_v27, 0.0  ;;  %v473_v15 = vmul.f32 0.6931472, %v635_v28 }
 0x126   :  { %v505_v31 = vsel %vm501_vm2, %v476_v29, 0.0  ;;  %536 = vst [vmem:[%s824_s3 + $0x8] sm:$0xff] %v504_v30 }
 0x127   :  { %v477_v32 = vsub.f32 0.0, %v473_v15  ;;  %537 = vst [vmem:[%s824_s3 + $0x10] sm:$0xff] %v505_v31 }
 0x129   :  { %v506_v33 = vsel %vm502_vm3, %v477_v32, 0.0 }
 0x12a   :  { %538 = vst [vmem:[%s824_s3 + $0x18] sm:$0xff] %v506_v33 }

</bundles_post_ra>
